<compile_context>
chip_gen: v5e
topology: v5e:2x2
jax: 0.10.0
libtpu: 0.0.40
codegen_flags: <defaults>
</compile_context>

<pallas_src>
import jax
import jax.numpy as jnp
from jax.experimental import pallas as pl
from jax.experimental.pallas import tpu as pltpu

HIDDEN = 128  # stands in for emsize=5120 in the reference module (small, lane-aligned)


def _round_up(x, m):
    return ((x + m - 1) // m) * m


def _tpu_budget():
    """Pick (tm_max, tc_max, vmem_limit_bytes) from the device's VMEM capacity."""
    try:
        vmem = pltpu.get_tpu_info().vmem_capacity_bytes
    except Exception:
        vmem = 64 * 1024 * 1024  # conservative (v7x-sized) fallback
    if vmem >= 128 * 1024 * 1024:        # v5e / v6e: 128 MiB VMEM
        return 512, 1024, 96 * 1024 * 1024
    return 256, 512, 48 * 1024 * 1024    # v7x: 64 MiB VMEM


# ----------------------------- Pallas kernel --------------------------------
def _mlp_head_kernel(x_ref, w1_ref, b1_ref, w2_ref, b2_ref, o_ref):
    """Fused Linear -> ReLU -> Linear; intermediate dim tiled on grid axis 1.

    For each intermediate chunk j:
        h_j  = relu(x @ W1[:, j*tc:(j+1)*tc] + b1[chunk j])   (bf16 MXU, f32 acc)
        o   += h_j @ W2[chunk j, :]                           (bf16 MXU, f32 acc)
    finalize (last chunk): o += b2
    The f32 output block is the accumulator (resident across j); no scratch.
    """
    j = pl.program_id(1)

    @pl.when(j == 0)
    def _init():
        o_ref[...] = jnp.zeros_like(o_ref)

    # Layer 1 column slab: bf16 matmul on the MXU, f32 accumulate; bias+ReLU in f32.
    h = jnp.dot(x_ref[...], w1_ref[...], preferred_element_type=jnp.float32)
    h = jnp.maximum(h + b1_ref[...], 0.0)

    # Layer 2 partial product accumulated straight into the resident output block.
    o_ref[...] += jnp.dot(h.astype(w2_ref.dtype), w2_ref[...],
                          preferred_element_type=jnp.float32)

    @pl.when(j == pl.num_programs(1) - 1)
    def _finalize():
        o_ref[...] = o_ref[...] + b2_ref[...]


def mlp_head(x_bf, w1_bf, b1_f, w2_bf, b2_f):
    """Apply the fused 2-layer MLP to x of shape [N, H] via Pallas.

    Expects bf16 activations/weights (master copies), f32 biases; returns f32.
    """
    n, h = x_bf.shape
    assert h % 128 == 0, "hidden dim must be lane-aligned (multiple of 128)"

    tm_max, tc_max, vmem_limit = _tpu_budget()

    # Row tile: biggest that fits the budget, rounded to 16 (bf16 sublane pack);
    # partial last row-block is masked by Pallas on writeback (no wrapper pad).
    tm = min(tm_max, _round_up(n, 16))
    # Intermediate-dim chunk must divide H exactly so no OOB garbage reaches
    # the accumulator (H=5120 -> 1024 on v5e/v6e, 512 on v7x; H=128 -> 128).
    tc = h
    for cand in (tc_max, tc_max // 2, 512, 256, 128):
        if cand <= h and h % cand == 0:
            tc = cand
            break

    grid = (pl.cdiv(n, tm), h // tc)

    cost = pl.CostEstimate(
        flops=4 * n * h * h,  # two [n,h]x[h,h] matmuls, 2 flops/MAC
        transcendentals=0,
        bytes_accessed=(x_bf.size * 2
                        + grid[0] * (w1_bf.size * 2 + w2_bf.size * 2)  # weights re-stream per row tile
                        + b1_f.size * 4 + b2_f.size * 4
                        + n * h * 4),
    )

    return pl.pallas_call(
        _mlp_head_kernel,
        out_shape=jax.ShapeDtypeStruct((n, h), jnp.float32),
        grid_spec=pltpu.PrefetchScalarGridSpec(
            num_scalar_prefetch=0,
            grid=grid,
            in_specs=[
                pl.BlockSpec((tm, h), lambda i, j: (i, 0)),   # activations (row-tiled)
                pl.BlockSpec((h, tc), lambda i, j: (0, j)),   # W1 column slab
                pl.BlockSpec((1, tc), lambda i, j: (0, j)),   # b1 chunk
                pl.BlockSpec((tc, h), lambda i, j: (j, 0)),   # W2 row slab
                pl.BlockSpec((1, h), lambda i, j: (0, 0)),    # b2 (tiny, resident)
            ],
            out_specs=pl.BlockSpec((tm, h), lambda i, j: (i, 0)),  # resident over j = accumulator
        ),
        compiler_params=pltpu.CompilerParams(
            dimension_semantics=("parallel", "arbitrary"),
            vmem_limit_bytes=vmem_limit,
        ),
        cost_estimate=cost,
    )(x_bf, w1_bf, b1_f, w2_bf, b2_f)


# ------------------------------ Module (glue) --------------------------------
class SoftPromptuningLLM:
    """JAX/Pallas port of soft_promptuning_LLM (forward semantics, no LLM body)."""

    def __init__(self, key, vocab_size, ncandidate, hidden=HIDDEN):
        ks = jax.random.split(key, 6)
        scale = 1.0 / jnp.sqrt(jnp.float32(hidden))
        self.hidden = hidden
        # self.embed_layer = llm_model.get_input_embeddings() -> Embedding(vocab, H)
        self.embed_table = jax.random.normal(ks[0], (vocab_size, hidden), jnp.float32)
        # PromptEncoder.cand_embeddings = nn.Embedding(ncandidate, H)
        self.cand_table = jax.random.normal(ks[1], (ncandidate, hidden), jnp.float32)
        # PromptEncoder.mlp_head = Linear(H,H) -> ReLU -> Linear(H,H)  (f32 masters)
        self.w1 = jax.random.uniform(ks[2], (hidden, hidden), jnp.float32, -scale, scale)
        self.b1 = jax.random.uniform(ks[3], (1, hidden), jnp.float32, -scale, scale)
        self.w2 = jax.random.uniform(ks[4], (hidden, hidden), jnp.float32, -scale, scale)
        self.b2 = jax.random.uniform(ks[5], (1, hidden), jnp.float32, -scale, scale)
        # bf16 master copies created ONCE at init -- the kernel streams these
        # directly; no per-call f32->bf16 convert inside the jit'd forward.
        self.w1_bf = self.w1.astype(jnp.bfloat16)
        self.w2_bf = self.w2.astype(jnp.bfloat16)
        self.cand_table_bf = self.cand_table.astype(jnp.bfloat16)

    def _cand_mlp_table(self):
        # Dedup: run the fused MLP ONCE over the whole (small) candidate table.
        # args.init=False path: mlp_head(cand_embeddings.weight).
        # TODO(synk): args.init=True path reads prompt_init_3.json from disk; not reproducible here.
        return mlp_head(self.cand_table_bf, self.w1_bf, self.b1, self.w2_bf, self.b2)

    def prompt_encoder(self, idx_flat):
        # Gather MLP *outputs* instead of pushing duplicate rows through the kernel.
        return jnp.take(self._cand_mlp_table(), idx_flat, axis=0)

    def forward(self, candidates, pre_text, behind_text, mask, labels, candidate_num):
        # w_pre = embed_layer(pre_text); w_beh = embed_layer(behind_text)
        w_pre = jnp.take(self.embed_table, pre_text, axis=0)         # [B, Lpre, H]
        w_beh = jnp.take(self.embed_table, behind_text, axis=0)      # [B, Lbeh, H]
        b = candidates.shape[0]
        # "for i in range(candidate_num): append prompt_encoder(candidates[:, i]).unsqueeze(1)"
        # batched: one kernel over the candidate table, then gather [B*C] rows -> [B, C, H].
        cand_flat = candidates[:, :candidate_num].reshape(-1)
        cand_emb = self.prompt_encoder(cand_flat).reshape(b, candidate_num, self.hidden)
        src = jnp.concatenate([w_pre, cand_emb, w_beh], axis=1)      # torch.cat(embedding_list, 1)
        # TODO(synk): downstream llm_model(inputs_embeds=src, attention_mask=mask, labels=labels)
        # is a full LoRA-wrapped causal LM with no clean Pallas equivalent; return inputs_embeds.
        return src


# --------------------------------- driver ------------------------------------
if __name__ == "__main__":
    key = jax.random.PRNGKey(0)
    k_model, k_pre, k_beh, k_cand = jax.random.split(key, 4)

    B = 2
    L_PRE = 4
    L_BEH = 4
    CAND_NUM = 3
    VOCAB = 64
    NCAND = 16

    model = SoftPromptuningLLM(k_model, vocab_size=VOCAB, ncandidate=NCAND, hidden=HIDDEN)

    pre_text = jax.random.randint(k_pre, (B, L_PRE), 0, VOCAB, dtype=jnp.int32)
    behind_text = jax.random.randint(k_beh, (B, L_BEH), 0, VOCAB, dtype=jnp.int32)
    candidates = jax.random.randint(k_cand, (B, CAND_NUM), 0, NCAND, dtype=jnp.int32)
    total_len = L_PRE + CAND_NUM + L_BEH
    mask = jnp.ones((B, total_len), dtype=jnp.int32)      # unused by the returned hot path
    labels = jnp.zeros((B, total_len), dtype=jnp.int32)   # unused by the returned hot path

    # jit the whole forward so XLA schedules the gathers/concat around the kernel
    fwd = jax.jit(model.forward, static_argnums=(5,))
    src = fwd(candidates, pre_text, behind_text, mask, labels, CAND_NUM)
    src = jax.block_until_ready(src)

    assert src.shape == (B, total_len, HIDDEN), src.shape
    assert jnp.all(jnp.isfinite(src)), "non-finite values in output"
    print("KERNEL_OK")
</pallas_src>

<mosaic_0001>
module attributes {stable_mosaic.version = 11 : i64} {
  func.func @_mlp_head_kernel(%arg0: i32, %arg1: i32, %arg2: memref<16x128xbf16, #tpu.memory_space<vmem>>, %arg3: memref<128x128xbf16, #tpu.memory_space<vmem>>, %arg4: memref<1x128xf32, #tpu.memory_space<vmem>>, %arg5: memref<128x128xbf16, #tpu.memory_space<vmem>>, %arg6: memref<1x128xf32, #tpu.memory_space<vmem>>, %arg7: memref<16x128xf32, #tpu.memory_space<vmem>>) attributes {dimension_semantics = [#tpu.dimension_semantics<parallel>, #tpu.dimension_semantics<arbitrary>], iteration_bounds = array<i64: 1, 1>, scalar_prefetch = 0 : i64, scratch_operands = 0 : i64, tpu.core_type = #tpu.core_type<tc>, window_params = [{transform_indices = @transform_0, window_bounds = array<i64: 16, 128>}, {transform_indices = @transform_1, window_bounds = array<i64: 128, 128>}, {transform_indices = @transform_2, window_bounds = array<i64: 1, 128>}, {transform_indices = @transform_3, window_bounds = array<i64: 128, 128>}, {pipeline_mode = #tpu.pipeline_mode<synchronous>, transform_indices = @transform_4, window_bounds = array<i64: 1, 128>}, {transform_indices = @transform_5, window_bounds = array<i64: 16, 128>}]} {
    %c0_i32 = arith.constant 0 : i32
    %0 = arith.cmpi eq, %arg1, %c0_i32 : i32
    %1 = arith.extui %0 : i1 to i32
    %c0_i32_0 = arith.constant 0 : i32
    %2 = arith.cmpi ne, %1, %c0_i32_0 : i32
    scf.if %2 {
      %cst_16 = arith.constant 0.000000e+00 : f32
      %20 = vector.broadcast %cst_16 : f32 to vector<16x128xf32>
      %c0_17 = arith.constant 0 : index
      %c0_18 = arith.constant 0 : index
      %21 = vector.load %arg7[%c0_17, %c0_18] : memref<16x128xf32, #tpu.memory_space<vmem>>, vector<16x128xf32>
      tpu.vector_store %arg7[%c0_17, %c0_18], %20 {strides = array<i32>} : memref<16x128xf32, #tpu.memory_space<vmem>>, vector<16x128xf32>,
    } else {
    }
    %c0 = arith.constant 0 : index
    %c0_1 = arith.constant 0 : index
    %3 = vector.load %arg2[%c0, %c0_1] : memref<16x128xbf16, #tpu.memory_space<vmem>>, vector<16x128xbf16>
    %c0_2 = arith.constant 0 : index
    %c0_3 = arith.constant 0 : index
    %4 = vector.load %arg3[%c0_2, %c0_3] : memref<128x128xbf16, #tpu.memory_space<vmem>>, vector<128x128xbf16>
    %cst = arith.constant dense<0.000000e+00> : vector<16x128xf32>
    %5 = tpu.matmul %3, %4, %cst {dimension_numbers = #tpu.dot_dimension_numbers<[1], [0], [0], [1], [0, 0, 1, 1], [], []>} : vector<16x128xbf16>, vector<128x128xbf16>, vector<16x128xf32> -> vector<16x128xf32>
    %c0_4 = arith.constant 0 : index
    %c0_5 = arith.constant 0 : index
    %6 = vector.load %arg4[%c0_4, %c0_5] : memref<1x128xf32, #tpu.memory_space<vmem>>, vector<1x128xf32>
    %7 = vector.broadcast %6 : vector<1x128xf32> to vector<16x128xf32>
    %8 = arith.addf %5, %7 : vector<16x128xf32>
    %cst_6 = arith.constant 0.000000e+00 : f32
    %9 = vector.broadcast %cst_6 : f32 to vector<16x128xf32>
    %10 = arith.maximumf %8, %9 : vector<16x128xf32>
    %c0_7 = arith.constant 0 : index
    %c0_8 = arith.constant 0 : index
    %11 = vector.load %arg7[%c0_7, %c0_8] : memref<16x128xf32, #tpu.memory_space<vmem>>, vector<16x128xf32>
    %12 = arith.truncf %10 : vector<16x128xf32> to vector<16x128xbf16>
    %c0_9 = arith.constant 0 : index
    %c0_10 = arith.constant 0 : index
    %13 = vector.load %arg5[%c0_9, %c0_10] : memref<128x128xbf16, #tpu.memory_space<vmem>>, vector<128x128xbf16>
    %cst_11 = arith.constant dense<0.000000e+00> : vector<16x128xf32>
    %14 = tpu.matmul %12, %13, %cst_11 {dimension_numbers = #tpu.dot_dimension_numbers<[1], [0], [0], [1], [0, 0, 1, 1], [], []>} : vector<16x128xbf16>, vector<128x128xbf16>, vector<16x128xf32> -> vector<16x128xf32>
    %15 = arith.addf %11, %14 : vector<16x128xf32>
    %c0_12 = arith.constant 0 : index
    %c0_13 = arith.constant 0 : index
    %16 = vector.load %arg7[%c0_12, %c0_13] : memref<16x128xf32, #tpu.memory_space<vmem>>, vector<16x128xf32>
    tpu.vector_store %arg7[%c0_12, %c0_13], %15 {strides = array<i32>} : memref<16x128xf32, #tpu.memory_space<vmem>>, vector<16x128xf32>,
    %c0_i32_14 = arith.constant 0 : i32
    %17 = arith.cmpi eq, %arg1, %c0_i32_14 : i32
    %18 = arith.extui %17 : i1 to i32
    %c0_i32_15 = arith.constant 0 : i32
    %19 = arith.cmpi ne, %18, %c0_i32_15 : i32
    scf.if %19 {
      %c0_16 = arith.constant 0 : index
      %c0_17 = arith.constant 0 : index
      %20 = vector.load %arg7[%c0_16, %c0_17] : memref<16x128xf32, #tpu.memory_space<vmem>>, vector<16x128xf32>
      %c0_18 = arith.constant 0 : index
      %c0_19 = arith.constant 0 : index
      %21 = vector.load %arg6[%c0_18, %c0_19] : memref<1x128xf32, #tpu.memory_space<vmem>>, vector<1x128xf32>
      %22 = vector.broadcast %21 : vector<1x128xf32> to vector<16x128xf32>
      %23 = arith.addf %20, %22 : vector<16x128xf32>
      %c0_20 = arith.constant 0 : index
      %c0_21 = arith.constant 0 : index
      %24 = vector.load %arg7[%c0_20, %c0_21] : memref<16x128xf32, #tpu.memory_space<vmem>>, vector<16x128xf32>
      tpu.vector_store %arg7[%c0_20, %c0_21], %23 {strides = array<i32>} : memref<16x128xf32, #tpu.memory_space<vmem>>, vector<16x128xf32>,
    } else {
    }
    return
  }
  func.func @transform_0(%arg0: i32, %arg1: i32) -> (i32, i32) {
    %c0_i32 = arith.constant 0 : i32
    %c0_i32_0 = arith.constant 0 : i32
    return %arg0, %c0_i32 : i32, i32
  }
  func.func @transform_1(%arg0: i32, %arg1: i32) -> (i32, i32) {
    %c0_i32 = arith.constant 0 : i32
    %c0_i32_0 = arith.constant 0 : i32
    return %c0_i32, %arg1 : i32, i32
  }
  func.func @transform_2(%arg0: i32, %arg1: i32) -> (i32, i32) {
    %c0_i32 = arith.constant 0 : i32
    %c0_i32_0 = arith.constant 0 : i32
    return %c0_i32, %arg1 : i32, i32
  }
  func.func @transform_3(%arg0: i32, %arg1: i32) -> (i32, i32) {
    %c0_i32 = arith.constant 0 : i32
    %c0_i32_0 = arith.constant 0 : i32
    return %arg1, %c0_i32 : i32, i32
  }
  func.func @transform_4(%arg0: i32, %arg1: i32) -> (i32, i32) {
    %c0_i32 = arith.constant 0 : i32
    %c0_i32_0 = arith.constant 0 : i32
    %c0_i32_1 = arith.constant 0 : i32
    return %c0_i32, %c0_i32_0 : i32, i32
  }
  func.func @transform_5(%arg0: i32, %arg1: i32) -> (i32, i32) {
    %c0_i32 = arith.constant 0 : i32
    %c0_i32_0 = arith.constant 0 : i32
    return %arg0, %c0_i32 : i32, i32
  }
}

</mosaic_0001>

<bundles_post_ra>
// kernel: forward.1
= control target key start
LH: loop header
LB: loop body
LE: loop exit
PB: predicated region body
PF: predicated region fallthrough
CT: control target
= control target key end

     0   :  { %10 = vsyncpa [#allocation3], 0  ;;  %s494_s0 = inlined_call_operand.hbm [shape: bf16[16,128], index: 0, kind: input, shape index: {}]   ;;  %s495_s1 = inlined_call_operand.hbm [shape: bf16[128,128], index: 1, kind: input, shape index: {}]   ;;  %s496_s2 = inlined_call_operand.vmem [shape: f32[1,128], index: 2, kind: input, shape index: {}]   ;;  %s497_s3 = inlined_call_operand.hbm [shape: bf16[128,128], index: 3, kind: input, shape index: {}]   ;;  %s498_s4 = inlined_call_operand.vmem [shape: f32[1,128], index: 4, kind: input, shape index: {}]   ;;  %s499_s5 = inlined_call_operand.vmem [shape: f32[16,128], index: 5, kind: output, shape index: {}]  }
   0x1   :  { %11 = vsyncpa [#allocation5], 0  ;;  %s29_s20 = sshll.u32 %s495_s1, 4  ;;  %s438_s21 = smov [#allocation4]   ;;  %s30_s20 = int_to_ptr.hbm [resolvable:$true] %s29_s20 }
   0x2   :  { %s31_s22 = sshll.u32 %s438_s21, 4  ;;  %s16_s25 = sshll.u32 %s494_s0, 4  ;;  %s32_s22 = int_to_ptr.vmem [resolvable:$true] %s31_s22  ;;  %s17_s25 = int_to_ptr.hbm [resolvable:$true] %s16_s25 }
   0x3   :  { %s439_s26 = smov 64   ;;  %s440_s27 = smov 4  }
   0x4   :  { %37 = dma.hbm_to_vmem [thread:$0]  %s30_s20, 1024, %s32_s22, [#allocation5], %s439_s26, %s439_s26, %s440_s27  }
   0x5   :  { %s441_s28 = smov [#allocation2]   ;;  %s44_s7 = sshll.u32 %s497_s3, 4  ;;  %s45_s7 = int_to_ptr.hbm [resolvable:$true] %s44_s7 }
   0x6   :  { %s18_s29 = sshll.u32 %s441_s28, 4  ;;  %s442_s1 = smov [#allocation6]   ;;  %s19_s29 = int_to_ptr.vmem [resolvable:$true] %s18_s29 }
   0x7   :  { %24 = dma.hbm_to_vmem [thread:$0]  %s17_s25, 128, %s19_s29, [#allocation3], %s439_s26, %s439_s26, %s440_s27  }
   0x8   :  { %s46_s8 = sshll.u32 %s442_s1, 4  ;;  %s47_s8 = int_to_ptr.vmem [resolvable:$true] %s46_s8 }
   0x9   :  { %52 = dma.hbm_to_vmem [thread:$0]  %s45_s7, 1024, %s47_s8, [#allocation5], %s439_s26, %s439_s26, %s440_s27  }
   0xa   :  { %434 = dma.done.wait [#allocation3], 128  }
   0xb   :  { %435 = vsyncadd [#allocation3], 4294967168 }
   0xc   :  { %436 = dma.done.wait [#allocation5], 2048  }
   0xd   :  { %437 = vsyncadd [#allocation5], 4294965248  ;;  %v345_v0 = vld [vmem:[#allocation4 + $0x38] sm:$0xff]  ;;  %v344_v1 = vld [vmem:[#allocation4 + $0x30] sm:$0xff] }
   0xe   :  { %149 = vmatpush.bf16.msra.mxu0 %v345_v0  ;;  %v353_v2 = vld [vmem:[#allocation6 + $0x38] sm:$0xff]  ;;  %v352_v3 = vld [vmem:[#allocation6 + $0x30] sm:$0xff]  ;;  %v343_v4 = vld [vmem:[#allocation4 + $0x28] sm:$0xff] }
   0xf   :  { %232 = vmatpush.bf16.msra.mxu1 %v353_v2  ;;  %v351_v5 = vld [vmem:[#allocation6 + $0x28] sm:$0xff]  ;;  %v342_v6 = vld [vmem:[#allocation4 + $0x20] sm:$0xff]  ;;  %v341_v8 = vld [vmem:[#allocation4 + $0x18] sm:$0xff] }
  0x10   :  { %v350_v7 = vld [vmem:[#allocation6 + $0x20] sm:$0xff]  ;;  %v340_v9 = vld [vmem:[#allocation4 + $0x10] sm:$0xff]  ;;  %v339_v10 = vld [vmem:[#allocation4 + $0x8] sm:$0xff] }
  0x11   :  { %v338_v11 = vld [vmem:[#allocation4] sm:$0xff]  ;;  %v337_v12 = vld [vmem:[#allocation2] sm:$0xff]  ;;  %v348_v14 = vld [vmem:[#allocation6 + $0x10] sm:$0xff] }
  0x12   :  { %150 = vmatpush.bf16.msra.mxu0 %v344_v1  ;;  %v349_v13 = vld [vmem:[#allocation6 + $0x18] sm:$0xff]  ;;  %v347_v15 = vld [vmem:[#allocation6 + $0x8] sm:$0xff]  ;;  %v346_v16 = vld [vmem:[#allocation6] sm:$0xff] }
  0x13   :  { %233 = vmatpush.bf16.msra.mxu1 %v352_v3  ;;  %v360_v18 = vld [vmem:[%s496_s2] ss:$0 sm:$0xff] }
  0x14   :  { %v361_v25 = vld [vmem:[%s498_s4] ss:$0 sm:$0xff] }
  0x16   :  { %151 = vmatpush.bf16.msra.mxu0 %v343_v4 }
  0x17   :  { %234 = vmatpush.bf16.msra.mxu1 %v351_v5 }
  0x1a   :  { %152 = vmatpush.bf16.msra.mxu0 %v342_v6 }
  0x1b   :  { %235 = vmatpush.bf16.msra.mxu1 %v350_v7 }
  0x1e   :  { %153 = vmatpush.bf16.msra.mxu0 %v341_v8 }
  0x1f   :  { %236 = vmatpush.bf16.msra.mxu1 %v349_v13 }
  0x22   :  { %154 = vmatpush.bf16.msra.mxu0 %v340_v9 }
  0x23   :  { %237 = vmatpush.bf16.msra.mxu1 %v348_v14 }
  0x26   :  { %155 = vmatpush.bf16.msra.mxu0 %v339_v10 }
  0x27   :  { %238 = vmatpush.bf16.msra.mxu1 %v347_v15 }
  0x2a   :  { %156 = vmatpush.bf16.msra.mxu0 %v338_v11 }
  0x2b   :  { %239 = vmatpush.bf16.msra.mxu1 %v346_v16 }
  0x2d   :  { %157 = vmatmul.bf16.vlgmr.msra.gmra.mxu0 %v337_v12 }
  0xaa   :  { %v158_v17 = vpop.f32.mrf.mxu0 }
  0xab   :  { %v159_v19 = vadd.f32 %v360_v18, %v158_v17 }
  0xad   :  { %v163_v22 = vmax.f32 %v159_v19, 0.0 }
  0xb2   :  { %v160_v20 = vpop.f32.mrf.mxu0 }
  0xb3   :  { %v161_v21 = vadd.f32 %v360_v18, %v160_v20 }
  0xb5   :  { %v164_v23 = vmax.f32 %v161_v21, 0.0 }
  0xb7   :  { %v167_v24 = vpack.c.bf16 %v164_v23, %v163_v22 }
  0xb9   :  { %240 = vmatmul.bf16.vlgmr.msra.gmra.mxu1 %v167_v24 }
 0x136   :  { %v241_v26 = vpop.f32.mrf.mxu1 }
 0x137   :  { %v259_v27 = vadd.f32 %v361_v25, %v241_v26 }
 0x139   :  { %261 = vst [vmem:[%s499_s5] sm:$0xff] %v259_v27 }
 0x13e   :  { %v243_v28 = vpop.f32.mrf.mxu1 }
 0x13f   :  { %v260_v29 = vadd.f32 %v361_v25, %v243_v28 }
 0x141   :  { %262 = vst [vmem:[%s499_s5 + $0x8] sm:$0xff] %v260_v29 }
 0x142   :  { %267 = vsyncpa [#allocation3], 1 }
 0x143   :  { %268 = vsyncpa [#allocation5], 1 }

</bundles_post_ra>
